<compile_context>
chip_gen: v5e
topology: v5e:2x2
jax: 0.10.0
libtpu: 0.0.40
codegen_flags: <defaults>
</compile_context>

<pallas_src>
import functools

import jax
import jax.numpy as jnp
from jax.experimental import pallas as pl
from jax.experimental.pallas import tpu as pltpu

_LANES = 128
_SUBLANES = 8
_VREG_ELEMS = _SUBLANES * _LANES          # 1024

# TODO(synk): depth_act(mode='monodepth') source not provided; using the
# standard monodepth2 sigmoid disp-to-depth with (min_depth, max_depth) = (0.1, 100).
_MIN_DISP = 1.0 / 100.0
_MAX_DISP = 1.0 / 0.1
_DISP_RANGE = _MAX_DISP - _MIN_DISP


def _monodepth_act(x):
    """depth = 1 / (min_disp + (max_disp - min_disp) * sigmoid(x)), fused to
    one exp + one divide (numerically stable for |x| large)."""
    e = jnp.exp(-jnp.abs(x))
    num = 1.0 + e
    den = _MIN_DISP * num + _DISP_RANGE * jnp.where(x >= 0.0, 1.0, e)
    return num / den


def _masked_terms(x, t, mw, min_depth, max_depth, extra_mask=None):
    """Shared elementwise math: returns (mask_f32, log_minus, rel)."""
    x = x.astype(jnp.float32)
    t = t.astype(jnp.float32)
    mw = mw.astype(jnp.float32)
    p = _monodepth_act(x)
    mask = (t > min_depth) & (t < max_depth) & (mw != 0.0)
    if extra_mask is not None:
        mask = mask & extra_mask
    w = jnp.where(mask, mw, 0.0)          # zero (not multiply) so garbage NaNs die
    safe_t = jnp.where(mask, t, 1.0)
    safe_p = jnp.where(mask, p, 1.0)
    inv_t = 1.0 / safe_t                  # one reciprocal reused by both terms
    log_minus = jnp.log(safe_p * inv_t) * w       # == (log p - log t) * mw on mask
    rel = (safe_p - safe_t) * w * inv_t           # == (p - t) * mw / t on mask
    return mask.astype(jnp.float32), log_minus, rel


def _csum(x):
    # (chunk_rows, 128) -> (8, 128): pure VPU adds across vreg groups, no
    # cross-lane/sublane reduction in the steady state.
    return jnp.sum(x.reshape(-1, _SUBLANES, _LANES), axis=0)


def _tail_sums(x, t, mw, min_depth, max_depth):
    """Plain-JAX partial sums for the <1024-element ragged tail."""
    maskf, lm, rel = _masked_terms(x, t, mw, min_depth, max_depth)
    return jnp.stack([jnp.sum(maskf), jnp.sum(lm * lm), jnp.sum(lm),
                      jnp.sum(rel * rel), jnp.sum(jnp.abs(rel))])


def _depth_loss_kernel(pred_ref, tgt_ref, mw_ref, out_ref, acc_ref, *,
                       min_depth, max_depth, chunk_rows, full_chunks,
                       tail_chunks, tail_rows, n_blocks, blocks_per_split,
                       unroll):
    """Streams (block_rows, 128) tiles. One fused chunked pass per tile
    accumulates 5 per-(sublane,lane) partial sums into a VMEM accumulator:
      acc[0]=count, acc[1]=sum(log_minus^2), acc[2]=sum(log_minus),
      acc[3]=sum(rel^2), acc[4]=sum(|rel|)
    On each split's last step it emits the raw (5, 8, 128) partials; the final
    cross-lane reduction + 3-element loss math stay in plain JAX."""
    s = pl.program_id(0)
    i = pl.program_id(1)
    logical_block = s * blocks_per_split + i

    @pl.when(i == 0)
    def _init():
        acc_ref[...] = jnp.zeros_like(acc_ref)

    def run_chunks(n_chunks, row_limit):
        def body(c, carry):
            a_cnt, a_l2, a_l1, a_r2, a_r1 = carry
            base = pl.multiple_of(c * chunk_rows, chunk_rows)
            rows = pl.ds(base, chunk_rows)
            x = pred_ref[rows, :]
            t = tgt_ref[rows, :]
            mw = mw_ref[rows, :]
            extra = None
            if row_limit is not None:
                # Only the ragged last block pays for the iota row mask.
                rid = jax.lax.broadcasted_iota(
                    jnp.int32, (chunk_rows, _LANES), 0) + base
                extra = rid < row_limit
            maskf, lm, rel = _masked_terms(x, t, mw, min_depth, max_depth, extra)
            a_cnt = a_cnt + _csum(maskf)
            a_l2 = a_l2 + _csum(lm * lm)
            a_l1 = a_l1 + _csum(lm)
            a_r2 = a_r2 + _csum(rel * rel)
            a_r1 = a_r1 + _csum(jnp.abs(rel))
            return a_cnt, a_l2, a_l1, a_r2, a_r1

        carry0 = tuple(jnp.zeros((_SUBLANES, _LANES), jnp.float32)
                       for _ in range(5))
        un = max(1, min(unroll, n_chunks))
        carry = jax.lax.fori_loop(0, n_chunks, body, carry0, unroll=un)
        for k in range(5):
            acc_ref[k] += carry[k]

    has_partial = tail_rows > 0                       # static
    n_full = n_blocks - 1 if has_partial else n_blocks

    # Full interior blocks: no row mask, all chunks. Ghost blocks from the
    # split (logical_block >= n_blocks) match neither branch -> skipped.
    @pl.when(logical_block < n_full)
    def _full():
        run_chunks(full_chunks, None)

    if has_partial:
        @pl.when(logical_block == n_blocks - 1)
        def _partial():
            run_chunks(tail_chunks, tail_rows)

    @pl.when(i == pl.num_programs(1) - 1)
    def _finalize():
        out_ref[0] = acc_ref[...]


def depth_loss_forward(pred, target, mask_weight, *,
                       loss_weight=1.0, si_weight=1.0, sq_rel_weight=1.0,
                       abs_rel_weight=1.0, min_depth=0.0, max_depth=80.0,
                       reduction_override='mean',
                       block_rows=4096, chunk_rows=64, n_splits=1):
    """DepthLoss.forward with depth_act_mode='monodepth'.

    block_rows: streamed tile rows (f32: 4096 -> 12 MiB of double-buffered
      inputs, safe on every generation; 8192 is a good v6e choice).
    n_splits: outer 'parallel' grid axis; use 2 on v7x (2 TensorCores/chip),
      leave at 1 on v5e/v6e (single TC).
    """
    assert reduction_override in (None, 'none', 'mean', 'sum')
    weight = jnp.array([si_weight, sq_rel_weight, abs_rel_weight], jnp.float32)

    # Mirrors: if not torch.any(self.weight > 0): return (pred * weight).sum()
    # (static check — weights are python floats set at construction time)
    if not (si_weight > 0 or sq_rel_weight > 0 or abs_rel_weight > 0):
        return (pred.astype(jnp.float32) * weight).sum()

    E = pred.size
    E_main = (E // _VREG_ELEMS) * _VREG_ELEMS      # 1024-aligned prefix
    tail = E - E_main

    pred_f = pred.reshape(-1)
    tgt_f = target.reshape(-1)
    mw_f = mask_weight.reshape(-1)

    sums = jnp.zeros((5,), jnp.float32)

    if E_main > 0:
        # No padding: only the aligned prefix goes through the kernel. When
        # E % 1024 == 0 this is a free reshape; otherwise the prefix slice is
        # a single copy and the tiny tail never gets re-streamed.
        def main2d(x):
            if tail:
                x = x[:E_main]
            return x.reshape(-1, _LANES)

        pred2, tgt2, mw2 = main2d(pred_f), main2d(tgt_f), main2d(mw_f)
        n_rows = E_main // _LANES                   # multiple of 8

        # Chunk/tile sizing (all static python ints).
        chunk_rows = max(_SUBLANES, (chunk_rows // _SUBLANES) * _SUBLANES)
        chunk_rows = min(chunk_rows, n_rows)        # n_rows is a multiple of 8
        blk_chunks = max(1, min(block_rows // chunk_rows, n_rows // chunk_rows))
        block_rows_eff = blk_chunks * chunk_rows
        n_blocks = pl.cdiv(n_rows, block_rows_eff)
        tail_rows_blk = n_rows - (n_blocks - 1) * block_rows_eff
        has_partial = tail_rows_blk < block_rows_eff
        tail_chunks = pl.cdiv(tail_rows_blk, chunk_rows)

        n_splits_eff = max(1, min(int(n_splits), n_blocks))
        bps = pl.cdiv(n_blocks, n_splits_eff)

        def in_map(s, i):
            # Clamp so ghost blocks of a split re-point at the last real block
            # (their compute is skipped in-kernel).
            return (jnp.minimum(s * bps + i, n_blocks - 1), 0)

        kern = functools.partial(
            _depth_loss_kernel,
            min_depth=float(min_depth), max_depth=float(max_depth),
            chunk_rows=chunk_rows, full_chunks=blk_chunks,
            tail_chunks=tail_chunks,
            tail_rows=(tail_rows_blk if has_partial else 0),
            n_blocks=n_blocks, blocks_per_split=bps,
            unroll=4)

        in_spec = pl.BlockSpec((block_rows_eff, _LANES), in_map)
        partials = pl.pallas_call(
            kern,
            out_shape=jax.ShapeDtypeStruct(
                (n_splits_eff, 5, _SUBLANES, _LANES), jnp.float32),
            grid_spec=pltpu.PrefetchScalarGridSpec(
                num_scalar_prefetch=0,
                grid=(n_splits_eff, bps),
                in_specs=[in_spec, in_spec, in_spec],
                out_specs=pl.BlockSpec((1, 5, _SUBLANES, _LANES),
                                       lambda s, i: (s, 0, 0, 0)),
                scratch_shapes=[pltpu.VMEM((5, _SUBLANES, _LANES), jnp.float32)],
            ),
            compiler_params=pltpu.CompilerParams(
                dimension_semantics=("parallel", "arbitrary"),
                vmem_limit_bytes=32 * 1024 * 1024),
        )(pred2, tgt2, mw2)
        sums = sums + jnp.sum(partials, axis=(0, 2, 3))

    if tail > 0:
        sums = sums + _tail_sums(pred_f[E_main:], tgt_f[E_main:], mw_f[E_main:],
                                 float(min_depth), float(max_depth))

    # Final (tiny) reduction + 3-element loss math in plain JAX.
    n = sums[0]
    has = n > 0.0
    nf = jnp.where(has, n, 1.0)
    si = sums[1] / nf - sums[2] / (nf * nf)
    sq_rel = jnp.sqrt(sums[3] / nf)
    abs_rel = sums[4] / nf
    loss_vec = jnp.where(has, jnp.stack([si, sq_rel, abs_rel]),
                         jnp.zeros((3,), jnp.float32))

    # weighted_loss wrapper: elementwise weight, then reduction.
    loss_vec = loss_vec * weight
    if reduction_override == 'mean':
        loss = loss_vec.mean()
    elif reduction_override == 'sum':
        loss = loss_vec.sum()
    else:
        loss = loss_vec
    return loss_weight * loss


def _reference_forward(pred, target, mask_weight, *,
                       loss_weight=1.0, weight=(1.0, 1.0, 1.0),
                       min_depth=0.0, max_depth=80.0):
    """Pure-JAX reference (independent math path) for correctness check."""
    x = pred.reshape(-1).astype(jnp.float32)
    p = 1.0 / (_MIN_DISP + _DISP_RANGE * jax.nn.sigmoid(x))
    t = target.reshape(-1).astype(jnp.float32)
    mw = mask_weight.reshape(-1).astype(jnp.float32)
    mask = (t > min_depth) & (t < max_depth) & (mw != 0.0)
    n = jnp.sum(mask.astype(jnp.float32))
    safe_t = jnp.where(mask, t, 1.0)
    safe_p = jnp.where(mask, p, 1.0)
    log_minus = (jnp.log(safe_p) - jnp.log(safe_t)) * mw * mask
    minus = (safe_p - safe_t) * mw * mask
    rel = minus / safe_t
    nf = jnp.where(n > 0, n, 1.0)
    si = jnp.sum(log_minus ** 2) / nf - jnp.sum(log_minus) / nf ** 2
    sq = jnp.sqrt(jnp.sum(rel ** 2) / nf)
    ab = jnp.sum(jnp.abs(rel)) / nf
    vec = jnp.where(n > 0, jnp.stack([si, sq, ab]), jnp.zeros(3))
    return loss_weight * (vec * jnp.array(weight, jnp.float32)).mean()


if __name__ == "__main__":
    def make(key, shape, dtype=jnp.float32):
        k1, k2, k3 = jax.random.split(key, 3)
        pred = jax.random.normal(k1, shape, jnp.float32).astype(dtype)
        target = jax.random.uniform(k2, shape, jnp.float32,
                                    minval=-5.0, maxval=90.0).astype(dtype)
        mw = (jax.random.uniform(k3, shape) > 0.3).astype(dtype)
        return pred, target, mw

    # Test 1: small NCHW depth maps, default (production) config.
    p, t, m = make(jax.random.PRNGKey(0), (2, 4, 16, 16))
    out = jax.block_until_ready(depth_loss_forward(p, t, m))
    ref = _reference_forward(p, t, m)
    assert jnp.allclose(out, ref, rtol=1e-4, atol=1e-4), (out, ref)

    # Test 2: element count not a multiple of 1024 -> exercises the no-pad
    # JAX-side ragged-tail path.
    p, t, m = make(jax.random.PRNGKey(1), (2, 1, 20, 30))
    out = jax.block_until_ready(depth_loss_forward(p, t, m))
    ref = _reference_forward(p, t, m)
    assert jnp.allclose(out, ref, rtol=1e-4, atol=1e-4), (out, ref)

    # Test 3: multi-block grid, ragged last block (in-kernel iota-masked path),
    # 2-way parallel split with a skipped ghost block.
    p, t, m = make(jax.random.PRNGKey(2), (2, 1, 40, 64))
    out = jax.block_until_ready(
        depth_loss_forward(p, t, m, block_rows=16, chunk_rows=8, n_splits=2))
    ref = _reference_forward(p, t, m)
    assert jnp.allclose(out, ref, rtol=1e-4, atol=1e-4), (out, ref)

    # Test 4: native bf16 streaming (in-kernel cast to f32).
    p, t, m = make(jax.random.PRNGKey(3), (2, 2, 32, 64), dtype=jnp.bfloat16)
    out = jax.block_until_ready(depth_loss_forward(p, t, m))
    ref = _reference_forward(p, t, m)
    assert jnp.allclose(out, ref, rtol=1e-3, atol=1e-3), (out, ref)

    print("KERNEL_OK")
</pallas_src>

<mosaic_0001>
module attributes {stable_mosaic.version = 11 : i64} {
  func.func @_depth_loss_kernel(%arg0: i32, %arg1: i32, %arg2: memref<16x128xf32, #tpu.memory_space<vmem>>, %arg3: memref<16x128xf32, #tpu.memory_space<vmem>>, %arg4: memref<16x128xf32, #tpu.memory_space<vmem>>, %arg5: memref<1x5x8x128xf32, #tpu.memory_space<vmem>>, %arg6: memref<5x8x128xf32, #tpu.memory_space<vmem>>) attributes {dimension_semantics = [#tpu.dimension_semantics<parallel>, #tpu.dimension_semantics<arbitrary>], iteration_bounds = array<i64: 1, 1>, scalar_prefetch = 0 : i64, scratch_operands = 1 : i64, tpu.core_type = #tpu.core_type<tc>, window_params = [{transform_indices = @transform_0, window_bounds = array<i64: 16, 128>}, {transform_indices = @transform_1, window_bounds = array<i64: 16, 128>}, {transform_indices = @transform_2, window_bounds = array<i64: 16, 128>}, {transform_indices = @transform_3, window_bounds = array<i64: 1, 5, 8, 128>}]} {
    %c1_i32 = arith.constant 1 : i32
    %0 = arith.muli %arg0, %c1_i32 : i32
    %1 = arith.addi %0, %arg1 : i32
    %c0_i32 = arith.constant 0 : i32
    %2 = arith.cmpi eq, %arg1, %c0_i32 : i32
    %3 = arith.extui %2 : i1 to i32
    %c0_i32_0 = arith.constant 0 : i32
    %4 = arith.cmpi ne, %3, %c0_i32_0 : i32
    scf.if %4 {
      %cst = arith.constant 0.000000e+00 : f32
      %11 = vector.broadcast %cst : f32 to vector<5x8x128xf32>
      %c0 = arith.constant 0 : index
      %c0_5 = arith.constant 0 : index
      %c0_6 = arith.constant 0 : index
      %12 = vector.load %arg6[%c0, %c0_5, %c0_6] : memref<5x8x128xf32, #tpu.memory_space<vmem>>, vector<5x8x128xf32>
      tpu.vector_store %arg6[%c0, %c0_5, %c0_6], %11 {strides = array<i32>} : memref<5x8x128xf32, #tpu.memory_space<vmem>>, vector<5x8x128xf32>,
    } else {
    }
    %c1_i32_1 = arith.constant 1 : i32
    %5 = arith.cmpi slt, %1, %c1_i32_1 : i32
    %6 = arith.extui %5 : i1 to i32
    %c0_i32_2 = arith.constant 0 : i32
    %7 = arith.cmpi ne, %6, %c0_i32_2 : i32
    scf.if %7 {
      %cst = arith.constant 0.000000e+00 : f32
      %11 = vector.broadcast %cst : f32 to vector<8x128xf32>
      %cst_5 = arith.constant 0.000000e+00 : f32
      %12 = vector.broadcast %cst_5 : f32 to vector<8x128xf32>
      %cst_6 = arith.constant 0.000000e+00 : f32
      %13 = vector.broadcast %cst_6 : f32 to vector<8x128xf32>
      %cst_7 = arith.constant 0.000000e+00 : f32
      %14 = vector.broadcast %cst_7 : f32 to vector<8x128xf32>
      %cst_8 = arith.constant 0.000000e+00 : f32
      %15 = vector.broadcast %cst_8 : f32 to vector<8x128xf32>
      %c0_i32_9 = arith.constant 0 : i32
      %c16_i32 = arith.constant 16 : i32
      %16 = arith.muli %c0_i32_9, %c16_i32 : i32
      %17 = tpu.assume_multiple %16, 16 : i32
      %18 = arith.index_cast %17 : i32 to index
      %c0 = arith.constant 0 : index
      %19 = vector.load %arg2[%18, %c0] : memref<16x128xf32, #tpu.memory_space<vmem>>, vector<16x128xf32>
      %20 = arith.index_cast %17 : i32 to index
      %c0_10 = arith.constant 0 : index
      %21 = vector.load %arg3[%20, %c0_10] : memref<16x128xf32, #tpu.memory_space<vmem>>, vector<16x128xf32>
      %22 = arith.index_cast %17 : i32 to index
      %c0_11 = arith.constant 0 : index
      %23 = vector.load %arg4[%22, %c0_11] : memref<16x128xf32, #tpu.memory_space<vmem>>, vector<16x128xf32>
      %24 = math.absf %19 : vector<16x128xf32>
      %cst_12 = arith.constant 0.000000e+00 : f32
      %25 = vector.broadcast %cst_12 : f32 to vector<16x128xf32>
      %26 = arith.subf %25, %24 : vector<16x128xf32>
      %27 = math.exp %26 : vector<16x128xf32>
      %cst_13 = arith.constant 1.000000e+00 : f32
      %28 = vector.broadcast %cst_13 : f32 to vector<16x128xf32>
      %29 = arith.addf %28, %27 : vector<16x128xf32>
      %cst_14 = arith.constant 0.00999999977 : f32
      %30 = vector.broadcast %cst_14 : f32 to vector<16x128xf32>
      %31 = arith.mulf %30, %29 : vector<16x128xf32>
      %cst_15 = arith.constant 0.000000e+00 : f32
      %32 = vector.broadcast %cst_15 : f32 to vector<16x128xf32>
      %33 = arith.cmpf oge, %19, %32 : vector<16x128xf32>
      %cst_16 = arith.constant 1.000000e+00 : f32
      %34 = vector.broadcast %cst_16 : f32 to vector<16x128xf32>
      %35 = arith.select %33, %34, %27 : vector<16x128xi1>, vector<16x128xf32>
      %cst_17 = arith.constant 9.98999977 : f32
      %36 = vector.broadcast %cst_17 : f32 to vector<16x128xf32>
      %37 = arith.mulf %36, %35 : vector<16x128xf32>
      %38 = arith.addf %31, %37 : vector<16x128xf32>
      %39 = arith.divf %29, %38 : vector<16x128xf32>
      %cst_18 = arith.constant 0.000000e+00 : f32
      %40 = vector.broadcast %cst_18 : f32 to vector<16x128xf32>
      %41 = arith.cmpf ogt, %21, %40 : vector<16x128xf32>
      %cst_19 = arith.constant 8.000000e+01 : f32
      %42 = vector.broadcast %cst_19 : f32 to vector<16x128xf32>
      %43 = arith.cmpf olt, %21, %42 : vector<16x128xf32>
      %44 = arith.andi %41, %43 : vector<16x128xi1>
      %cst_20 = arith.constant 0.000000e+00 : f32
      %45 = vector.broadcast %cst_20 : f32 to vector<16x128xf32>
      %46 = arith.cmpf one, %23, %45 : vector<16x128xf32>
      %47 = arith.andi %44, %46 : vector<16x128xi1>
      %cst_21 = arith.constant 0.000000e+00 : f32
      %48 = vector.broadcast %cst_21 : f32 to vector<16x128xf32>
      %49 = arith.select %47, %23, %48 : vector<16x128xi1>, vector<16x128xf32>
      %cst_22 = arith.constant 1.000000e+00 : f32
      %50 = vector.broadcast %cst_22 : f32 to vector<16x128xf32>
      %51 = arith.select %47, %21, %50 : vector<16x128xi1>, vector<16x128xf32>
      %cst_23 = arith.constant 1.000000e+00 : f32
      %52 = vector.broadcast %cst_23 : f32 to vector<16x128xf32>
      %53 = arith.select %47, %39, %52 : vector<16x128xi1>, vector<16x128xf32>
      %cst_24 = arith.constant 1.000000e+00 : f32
      %54 = vector.broadcast %cst_24 : f32 to vector<16x128xf32>
      %55 = arith.divf %54, %51 : vector<16x128xf32>
      %56 = arith.mulf %53, %55 : vector<16x128xf32>
      %57 = math.log %56 : vector<16x128xf32>
      %58 = arith.mulf %57, %49 : vector<16x128xf32>
      %59 = arith.subf %53, %51 : vector<16x128xf32>
      %60 = arith.mulf %59, %49 : vector<16x128xf32>
      %61 = arith.mulf %60, %55 : vector<16x128xf32>
      %62 = arith.extui %47 : vector<16x128xi1> to vector<16x128xi32>
      %63 = arith.sitofp %62 : vector<16x128xi32> to vector<16x128xf32>
      %64 = vector.shape_cast %63 : vector<16x128xf32> to vector<2x8x128xf32>
      %cst_25 = arith.constant dense<0.000000e+00> : vector<8x128xf32>
      %65 = vector.multi_reduction <add>, %64, %cst_25 [0] : vector<2x8x128xf32> to vector<8x128xf32>
      %66 = arith.addf %11, %65 : vector<8x128xf32>
      %67 = arith.mulf %58, %58 : vector<16x128xf32>
      %68 = vector.shape_cast %67 : vector<16x128xf32> to vector<2x8x128xf32>
      %cst_26 = arith.constant dense<0.000000e+00> : vector<8x128xf32>
      %69 = vector.multi_reduction <add>, %68, %cst_26 [0] : vector<2x8x128xf32> to vector<8x128xf32>
      %70 = arith.addf %12, %69 : vector<8x128xf32>
      %71 = vector.shape_cast %58 : vector<16x128xf32> to vector<2x8x128xf32>
      %cst_27 = arith.constant dense<0.000000e+00> : vector<8x128xf32>
      %72 = vector.multi_reduction <add>, %71, %cst_27 [0] : vector<2x8x128xf32> to vector<8x128xf32>
      %73 = arith.addf %13, %72 : vector<8x128xf32>
      %74 = arith.mulf %61, %61 : vector<16x128xf32>
      %75 = vector.shape_cast %74 : vector<16x128xf32> to vector<2x8x128xf32>
      %cst_28 = arith.constant dense<0.000000e+00> : vector<8x128xf32>
      %76 = vector.multi_reduction <add>, %75, %cst_28 [0] : vector<2x8x128xf32> to vector<8x128xf32>
      %77 = arith.addf %14, %76 : vector<8x128xf32>
      %78 = math.absf %61 : vector<16x128xf32>
      %79 = vector.shape_cast %78 : vector<16x128xf32> to vector<2x8x128xf32>
      %cst_29 = arith.constant dense<0.000000e+00> : vector<8x128xf32>
      %80 = vector.multi_reduction <add>, %79, %cst_29 [0] : vector<2x8x128xf32> to vector<8x128xf32>
      %81 = arith.addf %15, %80 : vector<8x128xf32>
      %c1_i32_30 = arith.constant 1 : i32
      %c0_31 = arith.constant 0 : index
      %c0_32 = arith.constant 0 : index
      %c0_33 = arith.constant 0 : index
      %82 = vector.load %arg6[%c0_31, %c0_32, %c0_33] : memref<5x8x128xf32, #tpu.memory_space<vmem>>, vector<1x8x128xf32>
      %83 = vector.shape_cast %82 : vector<1x8x128xf32> to vector<8x128xf32>
      %84 = arith.addf %83, %66 : vector<8x128xf32>
      %c0_34 = arith.constant 0 : index
      %c0_35 = arith.constant 0 : index
      %c0_36 = arith.constant 0 : index
      %85 = vector.load %arg6[%c0_34, %c0_35, %c0_36] : memref<5x8x128xf32, #tpu.memory_space<vmem>>, vector<1x8x128xf32>
      %86 = vector.shape_cast %85 : vector<1x8x128xf32> to vector<8x128xf32>
      %87 = vector.shape_cast %84 : vector<8x128xf32> to vector<1x8x128xf32>
      tpu.vector_store %arg6[%c0_34, %c0_35, %c0_36], %87 {strides = array<i32>} : memref<5x8x128xf32, #tpu.memory_space<vmem>>, vector<1x8x128xf32>,
      %c1 = arith.constant 1 : index
      %c0_37 = arith.constant 0 : index
      %c0_38 = arith.constant 0 : index
      %88 = vector.load %arg6[%c1, %c0_37, %c0_38] : memref<5x8x128xf32, #tpu.memory_space<vmem>>, vector<1x8x128xf32>
      %89 = vector.shape_cast %88 : vector<1x8x128xf32> to vector<8x128xf32>
      %90 = arith.addf %89, %70 : vector<8x128xf32>
      %c1_39 = arith.constant 1 : index
      %c0_40 = arith.constant 0 : index
      %c0_41 = arith.constant 0 : index
      %91 = vector.load %arg6[%c1_39, %c0_40, %c0_41] : memref<5x8x128xf32, #tpu.memory_space<vmem>>, vector<1x8x128xf32>
      %92 = vector.shape_cast %91 : vector<1x8x128xf32> to vector<8x128xf32>
      %93 = vector.shape_cast %90 : vector<8x128xf32> to vector<1x8x128xf32>
      tpu.vector_store %arg6[%c1_39, %c0_40, %c0_41], %93 {strides = array<i32>} : memref<5x8x128xf32, #tpu.memory_space<vmem>>, vector<1x8x128xf32>,
      %c2 = arith.constant 2 : index
      %c0_42 = arith.constant 0 : index
      %c0_43 = arith.constant 0 : index
      %94 = vector.load %arg6[%c2, %c0_42, %c0_43] : memref<5x8x128xf32, #tpu.memory_space<vmem>>, vector<1x8x128xf32>
      %95 = vector.shape_cast %94 : vector<1x8x128xf32> to vector<8x128xf32>
      %96 = arith.addf %95, %73 : vector<8x128xf32>
      %c2_44 = arith.constant 2 : index
      %c0_45 = arith.constant 0 : index
      %c0_46 = arith.constant 0 : index
      %97 = vector.load %arg6[%c2_44, %c0_45, %c0_46] : memref<5x8x128xf32, #tpu.memory_space<vmem>>, vector<1x8x128xf32>
      %98 = vector.shape_cast %97 : vector<1x8x128xf32> to vector<8x128xf32>
      %99 = vector.shape_cast %96 : vector<8x128xf32> to vector<1x8x128xf32>
      tpu.vector_store %arg6[%c2_44, %c0_45, %c0_46], %99 {strides = array<i32>} : memref<5x8x128xf32, #tpu.memory_space<vmem>>, vector<1x8x128xf32>,
      %c3 = arith.constant 3 : index
      %c0_47 = arith.constant 0 : index
      %c0_48 = arith.constant 0 : index
      %100 = vector.load %arg6[%c3, %c0_47, %c0_48] : memref<5x8x128xf32, #tpu.memory_space<vmem>>, vector<1x8x128xf32>
      %101 = vector.shape_cast %100 : vector<1x8x128xf32> to vector<8x128xf32>
      %102 = arith.addf %101, %77 : vector<8x128xf32>
      %c3_49 = arith.constant 3 : index
      %c0_50 = arith.constant 0 : index
      %c0_51 = arith.constant 0 : index
      %103 = vector.load %arg6[%c3_49, %c0_50, %c0_51] : memref<5x8x128xf32, #tpu.memory_space<vmem>>, vector<1x8x128xf32>
      %104 = vector.shape_cast %103 : vector<1x8x128xf32> to vector<8x128xf32>
      %105 = vector.shape_cast %102 : vector<8x128xf32> to vector<1x8x128xf32>
      tpu.vector_store %arg6[%c3_49, %c0_50, %c0_51], %105 {strides = array<i32>} : memref<5x8x128xf32, #tpu.memory_space<vmem>>, vector<1x8x128xf32>,
      %c4 = arith.constant 4 : index
      %c0_52 = arith.constant 0 : index
      %c0_53 = arith.constant 0 : index
      %106 = vector.load %arg6[%c4, %c0_52, %c0_53] : memref<5x8x128xf32, #tpu.memory_space<vmem>>, vector<1x8x128xf32>
      %107 = vector.shape_cast %106 : vector<1x8x128xf32> to vector<8x128xf32>
      %108 = arith.addf %107, %81 : vector<8x128xf32>
      %c4_54 = arith.constant 4 : index
      %c0_55 = arith.constant 0 : index
      %c0_56 = arith.constant 0 : index
      %109 = vector.load %arg6[%c4_54, %c0_55, %c0_56] : memref<5x8x128xf32, #tpu.memory_space<vmem>>, vector<1x8x128xf32>
      %110 = vector.shape_cast %109 : vector<1x8x128xf32> to vector<8x128xf32>
      %111 = vector.shape_cast %108 : vector<8x128xf32> to vector<1x8x128xf32>
      tpu.vector_store %arg6[%c4_54, %c0_55, %c0_56], %111 {strides = array<i32>} : memref<5x8x128xf32, #tpu.memory_space<vmem>>, vector<1x8x128xf32>,
    } else {
    }
    %c0_i32_3 = arith.constant 0 : i32
    %8 = arith.cmpi eq, %arg1, %c0_i32_3 : i32
    %9 = arith.extui %8 : i1 to i32
    %c0_i32_4 = arith.constant 0 : i32
    %10 = arith.cmpi ne, %9, %c0_i32_4 : i32
    scf.if %10 {
      %c0 = arith.constant 0 : index
      %c0_5 = arith.constant 0 : index
      %c0_6 = arith.constant 0 : index
      %11 = vector.load %arg6[%c0, %c0_5, %c0_6] : memref<5x8x128xf32, #tpu.memory_space<vmem>>, vector<5x8x128xf32>
      %c0_7 = arith.constant 0 : index
      %c0_8 = arith.constant 0 : index
      %c0_9 = arith.constant 0 : index
      %c0_10 = arith.constant 0 : index
      %12 = vector.load %arg5[%c0_7, %c0_8, %c0_9, %c0_10] : memref<1x5x8x128xf32, #tpu.memory_space<vmem>>, vector<1x5x8x128xf32>
      %13 = vector.shape_cast %12 : vector<1x5x8x128xf32> to vector<5x8x128xf32>
      %14 = vector.shape_cast %11 : vector<5x8x128xf32> to vector<1x5x8x128xf32>
      tpu.vector_store %arg5[%c0_7, %c0_8, %c0_9, %c0_10], %14 {strides = array<i32>} : memref<1x5x8x128xf32, #tpu.memory_space<vmem>>, vector<1x5x8x128xf32>,
    } else {
    }
    return
  }
  func.func @transform_0(%arg0: i32, %arg1: i32) -> (i32, i32) {
    %c1_i32 = arith.constant 1 : i32
    %0 = arith.muli %arg0, %c1_i32 : i32
    %1 = arith.addi %0, %arg1 : i32
    %c0_i32 = arith.constant 0 : i32
    %2 = arith.minsi %1, %c0_i32 : i32
    %c0_i32_0 = arith.constant 0 : i32
    %c0_i32_1 = arith.constant 0 : i32
    return %2, %c0_i32_0 : i32, i32
  }
  func.func @transform_1(%arg0: i32, %arg1: i32) -> (i32, i32) {
    %c1_i32 = arith.constant 1 : i32
    %0 = arith.muli %arg0, %c1_i32 : i32
    %1 = arith.addi %0, %arg1 : i32
    %c0_i32 = arith.constant 0 : i32
    %2 = arith.minsi %1, %c0_i32 : i32
    %c0_i32_0 = arith.constant 0 : i32
    %c0_i32_1 = arith.constant 0 : i32
    return %2, %c0_i32_0 : i32, i32
  }
  func.func @transform_2(%arg0: i32, %arg1: i32) -> (i32, i32) {
    %c1_i32 = arith.constant 1 : i32
    %0 = arith.muli %arg0, %c1_i32 : i32
    %1 = arith.addi %0, %arg1 : i32
    %c0_i32 = arith.constant 0 : i32
    %2 = arith.minsi %1, %c0_i32 : i32
    %c0_i32_0 = arith.constant 0 : i32
    %c0_i32_1 = arith.constant 0 : i32
    return %2, %c0_i32_0 : i32, i32
  }
  func.func @transform_3(%arg0: i32, %arg1: i32) -> (i32, i32, i32, i32) {
    %c0_i32 = arith.constant 0 : i32
    %c0_i32_0 = arith.constant 0 : i32
    %c0_i32_1 = arith.constant 0 : i32
    %c0_i32_2 = arith.constant 0 : i32
    return %arg0, %c0_i32, %c0_i32_0, %c0_i32_1 : i32, i32, i32, i32
  }
}

</mosaic_0001>

<bundles_post_ra>
// kernel: tpu_custom_call.1
= control target key start
LH: loop header
LB: loop body
LE: loop exit
PB: predicated region body
PF: predicated region fallthrough
CT: control target
= control target key end

     0   :  { %8 = vsyncpa [#allocation4], 0  ;;  %s582_s0 = inlined_call_operand.hbm [shape: f32[16,128], index: 0, kind: input, shape index: {}]   ;;  %s583_s1 = inlined_call_operand.hbm [shape: f32[16,128], index: 1, kind: input, shape index: {}]   ;;  %s584_s2 = inlined_call_operand.hbm [shape: f32[16,128], index: 2, kind: input, shape index: {}]   ;;  %s585_s3 = inlined_call_operand.hbm [shape: f32[1,5,8,128], index: 3, kind: output, shape index: {}]  }
   0x1   :  { %9 = vsyncpa [#allocation7], 0 }
   0x2   :  { %10 = vsyncpa [#allocation5], 0  ;;  %s40_s14 = sshll.u32 %s583_s1, 4  ;;  %s427_s15 = smov [#allocation6]   ;;  %s41_s14 = int_to_ptr.hbm [resolvable:$true] %s40_s14 }
   0x3   :  { %s42_s16 = sshll.u32 %s427_s15, 4  ;;  %s21_s19 = sshll.u32 %s582_s0, 4  ;;  %s43_s16 = int_to_ptr.vmem [resolvable:$true] %s42_s16  ;;  %s22_s19 = int_to_ptr.hbm [resolvable:$true] %s21_s19 }
   0x4   :  { %s428_s20 = smov 128   ;;  %s429_s21 = smov 8  }
   0x5   :  { %48 = dma.hbm_to_vmem [thread:$0]  %s41_s14, 256, %s43_s16, [#allocation7], %s428_s20, %s428_s20, %s429_s21  }
   0x6   :  { %s430_s22 = smov [#allocation3]   ;;  %s59_s1 = sshll.u32 %s584_s2, 4  ;;  %s60_s1 = int_to_ptr.hbm [resolvable:$true] %s59_s1 }
   0x7   :  { %s23_s23 = sshll.u32 %s430_s22, 4  ;;  %s431_s0 = smov [#allocation8]   ;;  %s24_s23 = int_to_ptr.vmem [resolvable:$true] %s23_s23 }
   0x8   :  { %29 = dma.hbm_to_vmem [thread:$0]  %s22_s19, 256, %s24_s23, [#allocation4], %s428_s20, %s428_s20, %s429_s21  }
   0x9   :  { %s61_s26 = sshll.u32 %s431_s0, 4  ;;  %s62_s26 = int_to_ptr.vmem [resolvable:$true] %s61_s26 }
   0xa   :  { %67 = dma.hbm_to_vmem [thread:$0]  %s60_s1, 256, %s62_s26, [#allocation7], %s428_s20, %s428_s20, %s429_s21  }
   0xb   :  { %421 = dma.done.wait [#allocation4], 256  }
   0xc   :  { %422 = vsyncadd [#allocation4], 4294967040 }
   0xd   :  { %423 = dma.done.wait [#allocation7], 512  }
   0xe   :  { %424 = vsyncadd [#allocation7], 4294966784  ;;  %v106_v0 = vld [vmem:[#allocation3] sm:$0xff]  ;;  %v107_v1 = vld [vmem:[#allocation3 + $0x8] sm:$0xff]  ;;  %v432_v16 = vmov 0.0   ;;  %s433_s2 = smov [#allocation9]  }
   0xf   :  { %v108_v2 = vld [vmem:[#allocation6] sm:$0xff]  ;;  %v109_v3 = vld [vmem:[#allocation6 + $0x8] sm:$0xff]  ;;  %v472_v4 = vld [vmem:[#allocation8] sm:$0xff]  ;;  %v112_v6 = vand.u32 2147483647, %v106_v0  ;;  %vm124_vm10 = vcmp.ge.f32.partialorder %v106_v0, 0.0 }
  0x10   :  { %v474_v5 = vld [vmem:[#allocation8 + $0x8] sm:$0xff]  ;;  %v113_v7 = vand.u32 2147483647, %v107_v1  ;;  %vm162_vm0 = vcmp.gt.f32.partialorder %v108_v2, 0.0  ;;  %vm163_vm1 = vcmp.gt.f32.partialorder %v109_v3, 0.0  ;;  %vm164_vm2 = vcmp.lt.f32.partialorder %v108_v2, 80.0 }
  0x11   :  { %v114_v8 = vsub.f32 0.0, %v112_v6  ;;  %vm165_vm3 = vcmp.lt.f32.partialorder %v109_v3, 80.0  ;;  %vm168_vm4 = vcmp.ne.f32.partialorder %v472_v4, 0.0  ;;  %vm166_vm5 = vmand %vm162_vm0, %vm164_vm2  ;;  %vm169_vm6 = vcmp.ne.f32.partialorder %v474_v5, 0.0  ;;  %s278_s27 = sshll.u32 %s433_s2, 4  ;;  %s280_s30 = sshll.u32 %s585_s3, 4  ;;  %s279_s27 = int_to_ptr.vmem [resolvable:$true] %s278_s27  ;;  %s281_s30 = int_to_ptr.hbm [resolvable:$true] %s280_s30 }
  0x12   :  { %v115_v9 = vsub.f32 0.0, %v113_v7  ;;  %vm167_vm7 = vmand %vm163_vm1, %vm165_vm3  ;;  %vm125_vm11 = vcmp.ge.f32.partialorder %v107_v1, 0.0 }
  0x13   :  { %v116_v10 = vmul.f32 1.442695, %v114_v8  ;;  %vm478_vm8 = vmand %vm166_vm5, %vm168_vm4 }
  0x14   :  { %v118_v11 = vmul.f32 1.442695, %v115_v9  ;;  %vm482_vm9 = vmand %vm167_vm7, %vm169_vm6  ;;  %v488_v14 = vsel %vm478_vm8, %v108_v2, 1.0  ;;  %v300_v17 = vsel %vm478_vm8, 1.0, %v432_v16 }
  0x15   :  { %309 = vpow2.f32 %v116_v10  ;;  %v492_v15 = vsel %vm482_vm9, %v109_v3, 1.0  ;;  %v301_v18 = vsel %vm482_vm9, 1.0, %v432_v16  ;;  %vm183_vm12 = vweird.f32 %v488_v14 }
  0x16   :  { %311 = vpow2.f32 %v118_v11  ;;  %v226_v19 = vadd.f32 %v301_v18, %v300_v17  ;;  %v187_v38 = vand.u32 2147483647, %v488_v14  ;;  %v189_v41 = vand.u32 2147483648, %v488_v14 }
  0x17   :  { %313 = vrcp.f32 %v488_v14  ;;  %vm198_vm13 = vweird.f32 %v492_v15  ;;  %v204_v42 = vand.u32 2147483648, %v492_v15  ;;  %v202_v58 = vand.u32 2147483647, %v492_v15 }
  0x18   :  { %315 = vrcp.f32 %v492_v15  ;;  %269 = vst [vmem:[#allocation9] sm:$0xff] %v226_v19  ;;  %vm547_vm7 = vcmp.eq.f32.partialorder %v187_v38, 8.507059e+37  ;;  %v190_v1 = vor.u32 1.1754944e-38, %v189_v41 }
  0x19   :  { %v205_v6 = vor.u32 1.1754944e-38, %v204_v42 }
  0x1b   :  { %v310_v20 = vpop.eup %309 }
  0x1c   :  { %v312_v21 = vpop.eup %311  ;;  %v500_v22 = vadd.f32 1.0, %v310_v20  ;;  %v126_v23 = vsel %vm124_vm10, 1.0, %v310_v20 }
  0x1d   :  { %v502_v24 = vpop.eup %313  ;;  %v504_v25 = vadd.f32 1.0, %v312_v21  ;;  %v127_v26 = vsel %vm125_vm11, 1.0, %v312_v21  ;;  %v128_v27 = vmul.f32 9.99, %v126_v23  ;;  %v172_v21 = vsel %vm478_vm8, %v472_v4, 0.0 }
  0x1e   :  { %v506_v28 = vpop.eup %315  ;;  %v122_v29 = vmul.f32 0.01, %v500_v22  ;;  %v129_v30 = vmul.f32 9.99, %v127_v26  ;;  %v179_v33 = vmul.f32 %v502_v24, %v488_v14  ;;  %vm184_vm14 = vweird.f32 %v502_v24 }
  0x1f   :  { %v123_v31 = vmul.f32 0.01, %v504_v25  ;;  %v194_v35 = vmul.f32 %v506_v28, %v492_v15  ;;  %vm199_vm15 = vweird.f32 %v506_v28  ;;  %vm528_vm4 = vmor %vm183_vm12, %vm184_vm14 }
  0x20   :  { %v130_v32 = vadd.f32 %v128_v27, %v122_v29  ;;  %v180_v36 = vsub.f32 1.0, %v179_v33  ;;  %vm537_vm5 = vmor %vm198_vm13, %vm199_vm15  ;;  %vm203_vm13 = vcmp.eq.f32.partialorder %v202_v58, 8.507059e+37 }
  0x21   :  { %v131_v34 = vadd.f32 %v129_v30, %v123_v31  ;;  %v195_v37 = vsub.f32 1.0, %v194_v35 }
  0x22   :  { %317 = vrcp.f32 %v130_v32  ;;  %v181_v40 = vmul.f32 %v502_v24, %v180_v36  ;;  %vm137_vm0 = vweird.f32 %v130_v32  ;;  %v141_v46 = vand.u32 2147483647, %v130_v32 }
  0x23   :  { %319 = vrcp.f32 %v131_v34  ;;  %v196_v45 = vmul.f32 %v506_v28, %v195_v37  ;;  %v143_v47 = vand.u32 2147483648, %v130_v32  ;;  %vm152_vm2 = vweird.f32 %v131_v34 }
  0x24   :  { %v158_v50 = vand.u32 2147483648, %v131_v34  ;;  %v156_v52 = vand.u32 2147483647, %v131_v34  ;;  %v182_v53 = vadd.f32 %v502_v24, %v181_v40  ;;  %vm142_vm10 = vcmp.eq.f32.partialorder %v141_v46, 8.507059e+37 }
  0x25   :  { %v197_v56 = vadd.f32 %v506_v28, %v196_v45  ;;  %v144_v60 = vor.u32 1.1754944e-38, %v143_v47 }
  0x26   :  { %v159_v0 = vor.u32 1.1754944e-38, %v158_v50  ;;  %vm157_vm12 = vcmp.eq.f32.partialorder %v156_v52, 8.507059e+37  ;;  %v186_v3 = vsel %vm528_vm4, %v502_v24, %v182_v53 }
  0x27   :  { %v201_v8 = vsel %vm537_vm5, %v506_v28, %v197_v56  ;;  %v191_v17 = vsel %vm547_vm7, %v190_v1, %v186_v3 }
  0x28   :  { %v318_v39 = vpop.eup %317  ;;  %v206_v19 = vsel %vm203_vm13, %v205_v6, %v201_v8 }
  0x29   :  { %v320_v43 = vpop.eup %319  ;;  %v133_v44 = vmul.f32 %v318_v39, %v130_v32  ;;  %vm138_vm1 = vweird.f32 %v318_v39 }
  0x2a   :  { %v148_v48 = vmul.f32 %v320_v43, %v131_v34  ;;  %vm153_vm3 = vweird.f32 %v320_v43  ;;  %vm543_vm6 = vmor %vm137_vm0, %vm138_vm1 }
  0x2b   :  { %v134_v49 = vsub.f32 1.0, %v133_v44  ;;  %vm154_vm11 = vmor %vm152_vm2, %vm153_vm3 }
  0x2c   :  { %v149_v51 = vsub.f32 1.0, %v148_v48 }
  0x2d   :  { %v135_v55 = vmul.f32 %v318_v39, %v134_v49 }
  0x2e   :  { %v150_v61 = vmul.f32 %v320_v43, %v149_v51 }
  0x2f   :  { %v136_v63 = vadd.f32 %v318_v39, %v135_v55 }
  0x30   :  { %v151_v2 = vadd.f32 %v320_v43, %v150_v61 }
  0x31   :  { %v140_v7 = vsel %vm543_vm6, %v318_v39, %v136_v63 }
  0x32   :  { %v145_v9 = vsel %vm142_vm10, %v144_v60, %v140_v7  ;;  %v155_v10 = vsel %vm154_vm11, %v320_v43, %v151_v2 }
  0x33   :  { %v146_v11 = vmul.f32 %v145_v9, %v500_v22  ;;  %v160_v16 = vsel %vm157_vm12, %v159_v0, %v155_v10  ;;  %v173_v22 = vsel %vm482_vm9, %v474_v5, 0.0 }
  0x34   :  { %v161_v18 = vmul.f32 %v160_v16, %v504_v25 }
  0x35   :  { %v176_v20 = vsel %vm478_vm8, %v146_v11, 1.0 }
  0x36   :  { %v177_v23 = vsel %vm482_vm9, %v161_v18, 1.0  ;;  %v208_v24 = vmul.f32 %v191_v17, %v176_v20  ;;  %v216_v26 = vsub.f32 %v176_v20, %v488_v14 }
  0x37   :  { %v209_v27 = vmul.f32 %v206_v19, %v177_v23  ;;  %v217_v25 = vsub.f32 %v177_v23, %v492_v15 }
  0x38   :  { %321 = vlog2.f32 %v208_v24  ;;  %v218_v28 = vmul.f32 %v216_v26, %v172_v21 }
  0x39   :  { %323 = vlog2.f32 %v209_v27  ;;  %v219_v29 = vmul.f32 %v217_v25, %v173_v22 }
  0x3a   :  { %v220_v30 = vmul.f32 %v218_v28, %v191_v17 }
  0x3b   :  { %v221_v12 = vmul.f32 %v219_v29, %v206_v19 }
  0x3c   :  { %v234_v4 = vmul.f32 %v220_v30, %v220_v30  ;;  %v238_v31 = vand.u32 2147483647, %v220_v30 }
  0x3d   :  { %v235_v32 = vmul.f32 %v221_v12, %v221_v12  ;;  %v239_v33 = vand.u32 2147483647, %v221_v12 }
  0x3e   :  { %v322_v34 = vpop.eup %321 }
  0x3f   :  { %v324_v35 = vpop.eup %323  ;;  %v211_v13 = vmul.f32 0.6931472, %v322_v34  ;;  %v236_v5 = vadd.f32 %v235_v32, %v234_v4  ;;  %v240_v36 = vadd.f32 %v239_v33, %v238_v31 }
  0x40   :  { %v213_v37 = vmul.f32 0.6931472, %v324_v35 }
  0x41   :  { %v214_v14 = vmul.f32 %v211_v13, %v172_v21  ;;  %272 = vst [vmem:[#allocation9 + $0x18] sm:$0xff] %v236_v5 }
  0x42   :  { %v215_v38 = vmul.f32 %v213_v37, %v173_v22  ;;  %273 = vst [vmem:[#allocation9 + $0x20] sm:$0xff] %v240_v36 }
  0x43   :  { %v228_v15 = vmul.f32 %v214_v14, %v214_v14 }
  0x44   :  { %v229_v39 = vmul.f32 %v215_v38, %v215_v38  ;;  %v232_v40 = vadd.f32 %v215_v38, %v214_v14 }
  0x46   :  { %v230_v41 = vadd.f32 %v229_v39, %v228_v15  ;;  %271 = vst [vmem:[#allocation9 + $0x10] sm:$0xff] %v232_v40 }
  0x48   :  { %270 = vst [vmem:[#allocation9 + $0x8] sm:$0xff] %v230_v41 }
  0x49   :  { %286 = dma.vmem_to_hbm [thread:$0]  %s279_s27, 640, %s281_s30, [#allocation5], %s428_s20, %s428_s20, %s429_s21  }
  0x4a   :  { %425 = dma.done.wait [#allocation5], 640  }
  0x4b   :  { %426 = vsyncadd [#allocation5], 4294966656 }
  0x4c   :  { %291 = vsyncpa [#allocation4], 1 }
  0x4d   :  { %292 = vsyncpa [#allocation7], 1 }
  0x4e   :  { %293 = vsyncpa [#allocation5], 1 }

</bundles_post_ra>
